<compile_context>
chip_gen: v7x
topology: tpu7x:2x2x1
jax: 0.10.0
libtpu: 0.0.40
codegen_flags: <defaults>
</compile_context>

<pallas_src>
import functools

import jax
import jax.numpy as jnp
from jax.experimental import pallas as pl
from jax.experimental.pallas import tpu as pltpu


def _focal_loss_kernel(logits_ref, targets_ref, out_ref, acc_ref, *,
                       alpha, gamma, n_rows, tiles_per_part, block_rows):
    p = pl.program_id(0)          # partition axis ("parallel")
    t = pl.program_id(1)          # row-tile within the partition ("arbitrary")

    @pl.when(t == 0)
    def _init():
        acc_ref[...] = jnp.zeros_like(acc_ref)

    x = logits_ref[...].astype(jnp.float32)        # (TN, C); f32 math keeps bf16 inputs accurate
    tgt = targets_ref[...]                         # (TN, 1) int32
    tn, c = x.shape

    # Numerically stable logsumexp (class axis is the full logical extent, so
    # no lane mask is needed -- Mosaic's internal lane padding is excluded
    # from the reductions).
    m = jnp.max(x, axis=-1, keepdims=True)         # (TN, 1)
    xm = x - m
    sumexp = jnp.sum(jnp.exp(xm), axis=-1, keepdims=True)   # (TN, 1), >= 1 for real rows

    # One-hot gather of the target column (no dynamic lane gather on TPU).
    col = jax.lax.broadcasted_iota(jnp.int32, (tn, c), 1)
    tgt_shift = jnp.sum(jnp.where(col == tgt, xm, 0.0),
                        axis=-1, keepdims=True)    # x_t - m  (<= 0)

    ce = jnp.log(sumexp) - tgt_shift               # per-sample CE, >= 0
    pt = jnp.exp(-ce)                              # (TN, 1) EUP op; no extra full-tile work
    base = jnp.maximum(1.0 - pt, 0.0)              # guard fp rounding before the power

    g = float(gamma)
    if g.is_integer() and g >= 0:                  # integer gamma: plain VPU multiplies
        w = jnp.ones_like(base)
        for _ in range(int(g)):
            w = w * base
    else:                                          # general gamma: pow (EUP exp/log)
        w = jnp.power(base, jnp.float32(g))

    focal = jnp.float32(alpha) * w * ce            # (TN, 1)

    # Mask rows past the logical batch (ragged last tile / clamped blocks may
    # hold garbage, Inf or NaN -- the select sinks them; mask is derived from
    # the logical row index, never from the data).
    row0 = (p * tiles_per_part + t) * block_rows
    rows = row0 + jax.lax.broadcasted_iota(jnp.int32, (tn, 1), 0)
    focal = jnp.where(rows < n_rows, focal, 0.0)

    acc_ref[...] = acc_ref[...] + jnp.sum(focal)   # scalar accumulate

    @pl.when(t == pl.num_programs(1) - 1)
    def _finalize():
        out_ref[...] = jnp.zeros_like(out_ref) + acc_ref[...]   # broadcast scalar


def _is_single_tensorcore_part():
    """Best-effort detection of 1-TC generations (v5e / v6e)."""
    try:
        kind = jax.devices()[0].device_kind.lower()
    except Exception:
        return False
    return any(s in kind for s in ("v5 lite", "v5e", "v5litepod", "v6 lite", "v6e"))


def focal_loss(logits, targets, alpha=0.25, gamma=2.0, reduction='mean'):
    """Focal loss over (N, C) logits and int class targets (N,)."""
    if reduction not in ('mean', 'sum'):
        # TODO(synk): reduction='none' (per-sample output) is not emitted by
        # this scalar-reduction kernel.
        raise NotImplementedError("reduction must be 'mean' or 'sum'")

    n, c = logits.shape
    itemsize = jnp.dtype(logits.dtype).itemsize
    row_align = 16 if itemsize < 4 else 8           # bf16 sublane tile is (16, 128)

    # Row tile: byte-driven. ~4 MiB per logits buffer; rows capped at 8192 so
    # the lane-padded (tn, 1) int32 targets VMEM tile (tn * 512 B) stays <= 4 MiB.
    LOGITS_BLOCK_BYTES = 4 * 1024 * 1024
    ROW_CAP = 8192
    bytes_per_row = max(1, c * itemsize)
    tn = (LOGITS_BLOCK_BYTES // bytes_per_row) // row_align * row_align
    tn = int(max(row_align, min(ROW_CAP, tn)))
    if tn >= n:
        tn = n                                      # full-extent rows: no alignment needed

    total_tiles = pl.cdiv(n, tn)
    num_parts = 1 if _is_single_tensorcore_part() else 2   # per-core partials (2 TCs on v7x)
    num_parts = max(1, min(num_parts, total_tiles))
    tiles_per_part = pl.cdiv(total_tiles, num_parts)

    targets2d = targets.astype(jnp.int32).reshape(n, 1)

    kernel = functools.partial(
        _focal_loss_kernel, alpha=float(alpha), gamma=float(gamma),
        n_rows=n, tiles_per_part=tiles_per_part, block_rows=tn)

    # Clamp logical block indices that fall past the last real tile (can happen
    # when total_tiles is not a multiple of num_parts); such tiles are fully
    # masked in-kernel via `rows < n_rows`.
    def row_block(pidx, tidx):
        return jnp.minimum(pidx * tiles_per_part + tidx, total_tiles - 1)

    cost = pl.CostEstimate(
        flops=int(6 * n * c),
        transcendentals=int(n * c),
        bytes_accessed=int(n * c * itemsize + n * 4 + num_parts * 8 * 128 * 4))

    partials = pl.pallas_call(
        kernel,
        out_shape=jax.ShapeDtypeStruct((num_parts * 8, 128), jnp.float32),
        grid_spec=pltpu.PrefetchScalarGridSpec(
            num_scalar_prefetch=0,
            grid=(num_parts, tiles_per_part),
            in_specs=[
                pl.BlockSpec((tn, c), lambda p, t: (row_block(p, t), 0)),
                pl.BlockSpec((tn, 1), lambda p, t: (row_block(p, t), 0)),
            ],
            out_specs=pl.BlockSpec((8, 128), lambda p, t: (p, 0)),
            scratch_shapes=[pltpu.VMEM((1, 1), jnp.float32)],
        ),
        compiler_params=pltpu.CompilerParams(
            dimension_semantics=("parallel", "arbitrary"),
            vmem_limit_bytes=48 * 1024 * 1024),
        cost_estimate=cost,
    )(logits, targets2d)

    total = jnp.sum(partials.reshape(num_parts, 8, 128)[:, 0, 0])
    if reduction == 'mean':
        return total / jnp.float32(n)
    return total


def _focal_loss_ref(logits, targets, alpha=0.25, gamma=2.0):
    # Pure-JAX reference (mirrors torch cross_entropy + focal weighting, mean).
    logp = jax.nn.log_softmax(logits.astype(jnp.float32), axis=-1)
    ce = -jnp.take_along_axis(logp, targets[:, None].astype(jnp.int32), axis=-1)[:, 0]
    pt = jnp.exp(-ce)
    return jnp.mean(alpha * (1.0 - pt) ** gamma * ce)


if __name__ == "__main__":
    key = jax.random.PRNGKey(0)
    k1, k2, k3, k4 = jax.random.split(key, 4)

    # Case 1: small classification batch (f32), default alpha/gamma.
    N, C = 8, 32
    logits = jax.random.normal(k1, (N, C), dtype=jnp.float32)
    targets = jax.random.randint(k2, (N,), 0, C, dtype=jnp.int32)
    out = jax.block_until_ready(focal_loss(logits, targets, alpha=0.25, gamma=2.0))
    ref = _focal_loss_ref(logits, targets, alpha=0.25, gamma=2.0)
    assert jnp.allclose(out, ref, atol=1e-5, rtol=1e-5), (out, ref)

    # Case 2: batch not a multiple of the tile + non-integer gamma (pow path).
    N2, C2 = 35, 32
    logits2 = jax.random.normal(k3, (N2, C2), dtype=jnp.float32)
    targets2 = jax.random.randint(k4, (N2,), 0, C2, dtype=jnp.int32)
    out2 = jax.block_until_ready(focal_loss(logits2, targets2, alpha=0.5, gamma=1.5))
    ref2 = _focal_loss_ref(logits2, targets2, alpha=0.5, gamma=1.5)
    assert jnp.allclose(out2, ref2, atol=1e-5, rtol=1e-5), (out2, ref2)

    # Case 3: bf16 logits streamed as stored (upcast to f32 inside the kernel).
    logits_bf16 = logits.astype(jnp.bfloat16)
    out3 = jax.block_until_ready(focal_loss(logits_bf16, targets))
    ref3 = _focal_loss_ref(logits_bf16.astype(jnp.float32), targets)
    assert jnp.allclose(out3, ref3, atol=1e-4, rtol=1e-4), (out3, ref3)

    # Case 4: 'sum' reduction path.
    out4 = jax.block_until_ready(focal_loss(logits, targets, reduction='sum'))
    ref4 = _focal_loss_ref(logits, targets) * N
    assert jnp.allclose(out4, ref4, atol=1e-4, rtol=1e-5), (out4, ref4)

    print("KERNEL_OK")
</pallas_src>

<mosaic_0001>
module attributes {stable_mosaic.version = 11 : i64} {
  func.func @_focal_loss_kernel(%arg0: i32, %arg1: i32, %arg2: memref<8x32xf32, #tpu.memory_space<vmem>>, %arg3: memref<8x1xi32, #tpu.memory_space<vmem>>, %arg4: memref<8x128xf32, #tpu.memory_space<vmem>>, %arg5: memref<1x1xf32, #tpu.memory_space<vmem>>) attributes {dimension_semantics = [#tpu.dimension_semantics<parallel>, #tpu.dimension_semantics<arbitrary>], iteration_bounds = array<i64: 1, 1>, scalar_prefetch = 0 : i64, scratch_operands = 1 : i64, tpu.core_type = #tpu.core_type<tc>, window_params = [{transform_indices = @transform_0, window_bounds = array<i64: 8, 32>}, {transform_indices = @transform_1, window_bounds = array<i64: 8, 1>}, {transform_indices = @transform_2, window_bounds = array<i64: 8, 128>}]} {
    %c0_i32 = arith.constant 0 : i32
    %0 = arith.cmpi eq, %arg1, %c0_i32 : i32
    %1 = arith.extui %0 : i1 to i32
    %c0_i32_0 = arith.constant 0 : i32
    %2 = arith.cmpi ne, %1, %c0_i32_0 : i32
    scf.if %2 {
      %cst_21 = arith.constant 0.000000e+00 : f32
      %55 = vector.broadcast %cst_21 : f32 to vector<1x1xf32>
      %c0_22 = arith.constant 0 : index
      %c0_23 = arith.constant 0 : index
      %56 = vector.load %arg5[%c0_22, %c0_23] : memref<1x1xf32, #tpu.memory_space<vmem>>, vector<1x1xf32>
      tpu.vector_store %arg5[%c0_22, %c0_23], %55 {strides = array<i32>} : memref<1x1xf32, #tpu.memory_space<vmem>>, vector<1x1xf32>,
    } else {
    }
    %c0 = arith.constant 0 : index
    %c0_1 = arith.constant 0 : index
    %3 = vector.load %arg2[%c0, %c0_1] : memref<8x32xf32, #tpu.memory_space<vmem>>, vector<8x32xf32>
    %c0_2 = arith.constant 0 : index
    %c0_3 = arith.constant 0 : index
    %4 = vector.load %arg3[%c0_2, %c0_3] : memref<8x1xi32, #tpu.memory_space<vmem>>, vector<8x1xi32>
    %cst = arith.constant dense<0xFF800000> : vector<8xf32>
    %5 = vector.multi_reduction <maximumf>, %3, %cst [1] : vector<8x32xf32> to vector<8xf32>
    %6 = vector.shape_cast %5 : vector<8xf32> to vector<8x1xf32>
    %7 = vector.broadcast %6 : vector<8x1xf32> to vector<8x32xf32>
    %8 = arith.subf %3, %7 : vector<8x32xf32>
    %9 = math.exp %8 : vector<8x32xf32>
    %cst_4 = arith.constant dense<0.000000e+00> : vector<8xf32>
    %10 = vector.multi_reduction <add>, %9, %cst_4 [1] : vector<8x32xf32> to vector<8xf32>
    %11 = vector.shape_cast %10 : vector<8xf32> to vector<8x1xf32>
    %12 = tpu.iota {dimensions = array<i32: 1>} : vector<8x32xi32>
    %13 = vector.broadcast %4 : vector<8x1xi32> to vector<8x32xi32>
    %14 = arith.cmpi eq, %12, %13 : vector<8x32xi32>
    %cst_5 = arith.constant 0.000000e+00 : f32
    %15 = vector.broadcast %cst_5 : f32 to vector<8x32xf32>
    %16 = arith.select %14, %8, %15 : vector<8x32xi1>, vector<8x32xf32>
    %cst_6 = arith.constant dense<0.000000e+00> : vector<8xf32>
    %17 = vector.multi_reduction <add>, %16, %cst_6 [1] : vector<8x32xf32> to vector<8xf32>
    %18 = vector.shape_cast %17 : vector<8xf32> to vector<8x1xf32>
    %19 = math.log %11 : vector<8x1xf32>
    %20 = arith.subf %19, %18 : vector<8x1xf32>
    %cst_7 = arith.constant 0.000000e+00 : f32
    %21 = vector.broadcast %cst_7 : f32 to vector<8x1xf32>
    %22 = arith.subf %21, %20 : vector<8x1xf32>
    %23 = math.exp %22 : vector<8x1xf32>
    %cst_8 = arith.constant 1.000000e+00 : f32
    %24 = vector.broadcast %cst_8 : f32 to vector<8x1xf32>
    %25 = arith.subf %24, %23 : vector<8x1xf32>
    %cst_9 = arith.constant 0.000000e+00 : f32
    %26 = vector.broadcast %cst_9 : f32 to vector<8x1xf32>
    %27 = arith.maximumf %25, %26 : vector<8x1xf32>
    %cst_10 = arith.constant 1.000000e+00 : f32
    %28 = vector.broadcast %cst_10 : f32 to vector<8x1xf32>
    %29 = arith.mulf %28, %27 : vector<8x1xf32>
    %30 = arith.mulf %29, %27 : vector<8x1xf32>
    %cst_11 = arith.constant 2.500000e-01 : f32
    %31 = vector.broadcast %cst_11 : f32 to vector<8x1xf32>
    %32 = arith.mulf %31, %30 : vector<8x1xf32>
    %33 = arith.mulf %32, %20 : vector<8x1xf32>
    %c1_i32 = arith.constant 1 : i32
    %34 = arith.muli %arg0, %c1_i32 : i32
    %35 = arith.addi %34, %arg1 : i32
    %c8_i32 = arith.constant 8 : i32
    %36 = arith.muli %35, %c8_i32 : i32
    %37 = tpu.iota {dimensions = array<i32: 0>} : vector<8x1xi32>
    %38 = vector.broadcast %36 : i32 to vector<8x1xi32>
    %39 = arith.addi %38, %37 : vector<8x1xi32>
    %c8_i32_12 = arith.constant 8 : i32
    %40 = vector.broadcast %c8_i32_12 : i32 to vector<8x1xi32>
    %41 = arith.cmpi slt, %39, %40 : vector<8x1xi32>
    %cst_13 = arith.constant 0.000000e+00 : f32
    %42 = vector.broadcast %cst_13 : f32 to vector<8x1xf32>
    %43 = arith.select %41, %33, %42 : vector<8x1xi1>, vector<8x1xf32>
    %c0_14 = arith.constant 0 : index
    %c0_15 = arith.constant 0 : index
    %44 = vector.load %arg5[%c0_14, %c0_15] : memref<1x1xf32, #tpu.memory_space<vmem>>, vector<1x1xf32>
    %45 = vector.shape_cast %43 : vector<8x1xf32> to vector<1x8x1xf32>
    %cst_16 = arith.constant dense<0.000000e+00> : vector<1xf32>
    %46 = vector.multi_reduction <add>, %45, %cst_16 [1, 2] : vector<1x8x1xf32> to vector<1xf32>
    %47 = vector.shape_cast %46 : vector<1xf32> to vector<1x1x1xf32>
    %48 = vector.extract %47[0, 0, 0] : f32 from vector<1x1x1xf32>
    %49 = vector.broadcast %48 : f32 to vector<1x1xf32>
    %50 = arith.addf %44, %49 : vector<1x1xf32>
    %c0_17 = arith.constant 0 : index
    %c0_18 = arith.constant 0 : index
    %51 = vector.load %arg5[%c0_17, %c0_18] : memref<1x1xf32, #tpu.memory_space<vmem>>, vector<1x1xf32>
    tpu.vector_store %arg5[%c0_17, %c0_18], %50 {strides = array<i32>} : memref<1x1xf32, #tpu.memory_space<vmem>>, vector<1x1xf32>,
    %c0_i32_19 = arith.constant 0 : i32
    %52 = arith.cmpi eq, %arg1, %c0_i32_19 : i32
    %53 = arith.extui %52 : i1 to i32
    %c0_i32_20 = arith.constant 0 : i32
    %54 = arith.cmpi ne, %53, %c0_i32_20 : i32
    scf.if %54 {
      %cst_21 = arith.constant 0.000000e+00 : f32
      %55 = vector.broadcast %cst_21 : f32 to vector<8x128xf32>
      %c0_22 = arith.constant 0 : index
      %c0_23 = arith.constant 0 : index
      %56 = vector.load %arg5[%c0_22, %c0_23] : memref<1x1xf32, #tpu.memory_space<vmem>>, vector<1x1xf32>
      %57 = vector.broadcast %56 : vector<1x1xf32> to vector<8x128xf32>
      %58 = arith.addf %55, %57 : vector<8x128xf32>
      %c0_24 = arith.constant 0 : index
      %c0_25 = arith.constant 0 : index
      %59 = vector.load %arg4[%c0_24, %c0_25] : memref<8x128xf32, #tpu.memory_space<vmem>>, vector<8x128xf32>
      tpu.vector_store %arg4[%c0_24, %c0_25], %58 {strides = array<i32>} : memref<8x128xf32, #tpu.memory_space<vmem>>, vector<8x128xf32>,
    } else {
    }
    return
  }
  func.func @transform_0(%arg0: i32, %arg1: i32) -> (i32, i32) {
    %c1_i32 = arith.constant 1 : i32
    %0 = arith.muli %arg0, %c1_i32 : i32
    %1 = arith.addi %0, %arg1 : i32
    %c0_i32 = arith.constant 0 : i32
    %2 = arith.minsi %1, %c0_i32 : i32
    %c0_i32_0 = arith.constant 0 : i32
    %c0_i32_1 = arith.constant 0 : i32
    return %2, %c0_i32_0 : i32, i32
  }
  func.func @transform_1(%arg0: i32, %arg1: i32) -> (i32, i32) {
    %c1_i32 = arith.constant 1 : i32
    %0 = arith.muli %arg0, %c1_i32 : i32
    %1 = arith.addi %0, %arg1 : i32
    %c0_i32 = arith.constant 0 : i32
    %2 = arith.minsi %1, %c0_i32 : i32
    %c0_i32_0 = arith.constant 0 : i32
    %c0_i32_1 = arith.constant 0 : i32
    return %2, %c0_i32_0 : i32, i32
  }
  func.func @transform_2(%arg0: i32, %arg1: i32) -> (i32, i32) {
    %c0_i32 = arith.constant 0 : i32
    %c0_i32_0 = arith.constant 0 : i32
    return %arg0, %c0_i32 : i32, i32
  }
}

</mosaic_0001>

<bundles_post_ra>
// kernel: tpu_custom_call.1
= control target key start
LH: loop header
LB: loop body
LE: loop exit
PB: predicated region body
PF: predicated region fallthrough
CT: control target
= control target key end

     0   :  { %vm74_vm0 = vcmask 261120   ;;  %s247_s0 = inlined_call_operand.vmem [shape: f32[8,32], index: 0, kind: input, shape index: {}]   ;;  %s248_s1 = inlined_call_operand.vmem [shape: s32[8,1], index: 1, kind: input, shape index: {}]   ;;  %s249_s2 = inlined_call_operand.hbm [shape: f32[8,128], index: 2, kind: output, shape index: {}]  }
   0x1   :  { %v72_v0 = vld [vmem:[%s247_s0] sm:$0xff] }
   0x2   :  { %7 = vsyncpa [#allocation4], 0  ;;  %v75_v1 = vsel %vm74_vm0, %v72_v0, -inf  ;;  %v208_v2 = vmov 0   ;;  %v73_v3 = vld [vmem:[%s248_s1] sm:$0xff]  ;;  %v84_v7 = vlaneseq  ;;  %vm114_vm2 = vcmask 7168  }
   0x3   :  { %176 = vset.pattern.permute.xlu0 %v208_v2  ;;  %177 = vset.pattern.permute.xlu1 %v208_v2  ;;  %vm70_vm3 = vcmask 0   ;;  %v209_v28 = vmov 0.0   ;;  %s210_s1 = smov [#allocation3]  }
   0x4   :  { %76 = vmax.xlane.f32.xlu0 %v75_v1  ;;  %v85_v8 = vand.u32 127, %v84_v7  ;;  %71 = vst.msk [vmem:[#allocation2] sm:$0x1] %vm70_vm3, %v209_v28  ;;  %s150_s13 = sshll.u32 %s210_s1, 4  ;;  %s151_s13 = int_to_ptr.vmem [resolvable:$true] %s150_s13 }
   0x5   :  { %s184_s14 = scalar_lea.vmem %s151_s13, 128  ;;  %p189_p1 = scmp.lt.s32.totalorder %s151_s13, %s151_s13 }
   0x6   :  { %p185_p0 = scmp.ne.s32.totalorder %s151_s13, %s184_s14  ;;  %p190_p2 = scmp.lt.s32.totalorder %s184_s14, %s184_s14 }
   0x8   :  { %p191_p3 = por %p190_p2, %p189_p1 }
   0xa   :  { %p192_p4 = pnand %p191_p3, %p185_p0 }
   0xb   :  { %v113_v36 = vld [vmem:[#allocation2] sm:$0x1] }
  0x1a   :  { %87 = vperm.xlu0 %176, %v73_v3  }
  0x91   :  { %v77_v4 = vpop.xlane.xlu0 %76 }
  0x92   :  { %v78_v5 = vsub.f32 %v72_v0, %v77_v4 }
  0x94   :  { %v79_v6 = vmul.f32 1.442695, %v78_v5 }
  0x96   :  { %178 = vpow2.f32 %v79_v6 }
  0x99   :  { %v88_v9 = vpop.permute.xlu0 %87 }
  0x9a   :  { %vm89_vm1 = vcmp.eq.s32.totalorder %v85_v8, %v88_v9 }
  0x9b   :  { %v90_v12 = vsel %vm89_vm1, %v78_v5, 0.0 }
  0x9c   :  { %v91_v13 = vsel %vm74_vm0, %v90_v12, 0.0 }
  0xa0   :  { %v179_v10 = vpop.eup %178 }
  0xa1   :  { %v81_v11 = vsel %vm74_vm0, %v179_v10, 0.0 }
  0xa2   :  { %82 = vadd.xlane.f32.xlu1 %v81_v11 }
  0xa6   :  { %92 = vadd.xlane.f32.xlu1 %v91_v13 }
 0x12f   :  { %v83_v14 = vpop.xlane.xlu1 %82 }
 0x130   :  { %180 = vlog2.f32 %v83_v14 }
 0x133   :  { %v93_v17 = vpop.xlane.xlu1 %92 }
 0x13a   :  { %v181_v15 = vpop.eup %180 }
 0x13b   :  { %v95_v16 = vmul.f32 0.6931472, %v181_v15 }
 0x13d   :  { %v96_v18 = vsub.f32 %v95_v16, %v93_v17 }
 0x13f   :  { %v97_v19 = vsub.f32 0.0, %v96_v18 }
 0x141   :  { %v98_v20 = vmul.f32 1.442695, %v97_v19 }
 0x143   :  { %182 = vpow2.f32 %v98_v20 }
 0x14d   :  { %v183_v21 = vpop.eup %182 }
 0x14e   :  { %v100_v22 = vsub.f32 1.0, %v183_v21 }
 0x150   :  { %v101_v23 = vmax.f32 %v100_v22, 0.0 }
 0x152   :  { %v102_v24 = vmul.f32 %v101_v23, %v101_v23 }
 0x154   :  { %v103_v25 = vmul.f32 0.25, %v102_v24 }
 0x156   :  { %v104_v26 = vmul.f32 %v103_v25, %v96_v18 }
 0x158   :  { %v115_v27 = vsel %vm114_vm2, %v104_v26, 0.0 }
 0x159   :  { %116 = vadd.xlane.f32.xlu1 %v115_v27 }
 0x1e6   :  { %v117_v29 = vpop.xlane.xlu1 %116 }
 0x1e7   :  { %v118_v30 = vrot.slane %v117_v29, 4 }
 0x1e9   :  { %v119_v31 = vadd.f32 %v118_v30, %v117_v29 }
 0x1eb   :  { %v120_v32 = vrot.slane %v119_v31, 2 }
 0x1ed   :  { %v121_v33 = vadd.f32 %v120_v32, %v119_v31 }
 0x1ef   :  { %v122_v34 = vrot.slane %v121_v33, 1 }
 0x1f1   :  { %v123_v35 = vadd.f32 %v122_v34, %v121_v33 }
 0x1f3   :  { %171 = vpush %v123_v35 }
 0x224   :  { %s172_s0 = spop %171 }
 0x225   :  { %v125_v37 = vstv %s172_s0 }
 0x226   :  { %v126_v38 = vadd.f32 %v125_v37, %v113_v36 }
 0x228   :  { %128 = vst.msk [vmem:[#allocation2] sm:$0x1] %vm70_vm3, %v126_v38 }
 0x22f   :  { %v170_v39 = vld [vmem:[#allocation2] ss:$0 sm:$0xff] }
 0x230   :  { %139 = vperm.xlu1 %177, %v170_v39  }
 0x2af   :  { %v140_v40 = vpop.permute.xlu1 %139 }
 0x2b0   :  { %143 = vst [vmem:[#allocation3] sm:$0xff] %v140_v40 }
 0x2b1   :  { %195 = shalt.err (!%p192_p4)
}
 0x2b2   :  { %s196_s17 = scalar_lea.hbm %s249_s2, 128 }
 0x2b3   :  { %p197_p5 = scmp.ne.s32.totalorder %s249_s2, %s196_s17  ;;  %p200_p6 = scmp.lt.u32.totalorder %s196_s17, %s249_s2 }
 0x2b5   :  { %p202_p7 = pnand %p200_p6, %p197_p5 }
 0x2b7   :  { %205 = shalt.err (!%p202_p7)
}
 0x2b8   :  { %153 = dma.vmem_to_hbm [thread:$0]  %s151_s13, 128, %s249_s2, [#allocation4]  }
 0x2b9   :  { %206 = dma.done.wait [#allocation4], 128  }
 0x2ba   :  { %207 = vsyncadd [#allocation4], 4294967168 }
 0x2bb   :  { %157 = vsyncpa [#allocation4], 1 }

</bundles_post_ra>
